<compile_context>
chip_gen: v5e
topology: v5e:2x2
jax: 0.10.0
libtpu: 0.0.40
codegen_flags: <defaults>
</compile_context>

<pallas_src>
import functools
import math

import jax
import jax.numpy as jnp
from jax.experimental import pallas as pl
from jax.experimental.pallas import tpu as pltpu


_ROW_TILE = 256      # M (token-row) tile target
_COL_TILE = 512      # N (output-column) tile target
_K_TILE = 512        # contraction tile target (proj / fc2)
_Q_TILE = 256        # attention query-row tile target
_VMEM_LIMIT = 48 * 1024 * 1024   # fits v7x (64 MiB phys), >> v5e 16 MiB default


def _pick_tile(total, target, align):
    """Largest divisor of `total` that is <= target and a multiple of `align`.

    Falls back to the full extent (always a legal Pallas block shape)."""
    if total <= target:
        return total
    t = (min(target, total) // align) * align
    while t >= align:
        if total % t == 0:
            return t
        t -= align
    return total


# ---------------------------------------------------------------------------
# Pallas kernels
# ---------------------------------------------------------------------------

def _layernorm_kernel(x_ref, g_ref, b_ref, o_ref, *, eps):
    x = x_ref[...].astype(jnp.float32)                        # (tm, D)
    mean = jnp.mean(x, axis=-1, keepdims=True)
    var = jnp.mean(jnp.square(x - mean), axis=-1, keepdims=True)
    y = (x - mean) * jax.lax.rsqrt(var + eps) * g_ref[...] + b_ref[...]
    o_ref[...] = y.astype(o_ref.dtype)                        # bf16 store


def _ln_matmul_kernel(x_ref, g_ref, beta_ref, w_ref, b_ref, o_ref, xn_ref, *,
                      eps, use_gelu):
    # Fused LayerNorm -> bf16 MXU matmul -> bias [-> GELU] with the LN result
    # hoisted: computed once per row tile (first (group, col) step) into a
    # bf16 VMEM scratch and reused for all other (group, col) steps.
    first = jnp.logical_and(pl.program_id(1) == 0, pl.program_id(2) == 0)

    @pl.when(first)
    def _():
        x = x_ref[...].astype(jnp.float32)                    # (tm, K)
        mean = jnp.mean(x, axis=-1, keepdims=True)
        var = jnp.mean(jnp.square(x - mean), axis=-1, keepdims=True)
        xn = (x - mean) * jax.lax.rsqrt(var + eps) * g_ref[...] + beta_ref[...]
        xn_ref[...] = xn.astype(jnp.bfloat16)

    y = jnp.dot(xn_ref[...], w_ref[...],
                preferred_element_type=jnp.float32)           # (tm, tn) f32 acc
    y = y + b_ref[...]
    if use_gelu:
        y = jax.nn.gelu(y, approximate=True)                  # tanh path -> EUP
    o_ref[...] = y.astype(o_ref.dtype)                        # bf16 store


def _matmul_bias_res_kernel(x_ref, w_ref, b_ref, res_ref, o_ref, acc_ref):
    # K-tiled bf16 MXU matmul with f32 accumulator; bias + residual fused
    # into the final store.
    @pl.when(pl.program_id(2) == 0)
    def _():
        acc_ref[...] = jnp.zeros_like(acc_ref)

    acc_ref[...] += jnp.dot(x_ref[...], w_ref[...],
                            preferred_element_type=jnp.float32)

    @pl.when(pl.program_id(2) == pl.num_programs(2) - 1)
    def _():
        y = acc_ref[...] + b_ref[...] + res_ref[...].astype(jnp.float32)
        o_ref[...] = y.astype(o_ref.dtype)                    # bf16 store


def _lm_head_kernel(x_ref, w_ref, o_ref):
    # Plain NN matmul against the pre-transposed bf16 (D, V_pad) embedding,
    # so no per-tile transpose through the XLU.
    o_ref[...] = jnp.dot(x_ref[...], w_ref[...],
                         preferred_element_type=jnp.float32)


def _attention_kernel(q_ref, k_ref, v_ref, o_ref, *, n_heads, scale, q_tile):
    # One (batch, query-row-tile) per grid step.  q/k/v blocks are bf16 with
    # full D as the last dim; heads are static column slices and each head's
    # result is written directly into its column range of o_ref.
    tq, D = q_ref.shape
    S = k_ref.shape[0]
    Dh = D // n_heads
    row0 = pl.program_id(1) * q_tile
    row = jax.lax.broadcasted_iota(jnp.int32, (tq, S), 0) + row0
    col = jax.lax.broadcasted_iota(jnp.int32, (tq, S), 1)
    causal = row >= col
    neg = jnp.float32(-1e30)
    for h in range(n_heads):
        lo, hi = h * Dh, (h + 1) * Dh
        qh = q_ref[:, lo:hi]                                  # (tq, Dh) bf16
        kh = k_ref[:, lo:hi]                                  # (S, Dh)  bf16
        vh = v_ref[:, lo:hi]                                  # (S, Dh)  bf16
        # q @ k^T via dot_general contracting last dims (no explicit k.T).
        s = jax.lax.dot_general(qh, kh, (((1,), (1,)), ((), ())),
                                preferred_element_type=jnp.float32) * scale
        s = jnp.where(causal, s, neg)                         # f32 mask path
        m = jnp.max(s, axis=-1, keepdims=True)
        p = jnp.exp(s - m)
        inv = pl.reciprocal(jnp.sum(p, axis=-1, keepdims=True), approx=True)
        p = (p * inv).astype(jnp.bfloat16)
        oh = jnp.dot(p, vh, preferred_element_type=jnp.float32)
        o_ref[:, lo:hi] = oh.astype(o_ref.dtype)              # per-head store


# ---------------------------------------------------------------------------
# pallas_call wrappers
# ---------------------------------------------------------------------------

def layer_norm(x, gamma, beta, eps=1e-5):
    """LayerNorm over f32 input, bf16 output."""
    N, D = x.shape
    tm = _pick_tile(N, _ROW_TILE, 8)
    g = gamma.reshape(1, D).astype(jnp.float32)
    b = beta.reshape(1, D).astype(jnp.float32)
    return pl.pallas_call(
        functools.partial(_layernorm_kernel, eps=eps),
        out_shape=jax.ShapeDtypeStruct((N, D), jnp.bfloat16),
        grid=(N // tm,),
        in_specs=[pl.BlockSpec((tm, D), lambda i: (i, 0)),
                  pl.BlockSpec((1, D), lambda i: (0, 0)),
                  pl.BlockSpec((1, D), lambda i: (0, 0))],
        out_specs=pl.BlockSpec((tm, D), lambda i: (i, 0)),
        compiler_params=pltpu.CompilerParams(
            dimension_semantics=("parallel",),
            vmem_limit_bytes=_VMEM_LIMIT),
    )(x, g, b)


def ln_matmul(x, gamma, beta, w, b, *, eps=1e-5, use_gelu=False):
    """Fused LayerNorm(x) @ W[g] + b[g] [-> GELU] over a leading group axis.

    x: (N, K) bf16; w: (G, K, Dg) bf16; b: (G, 1, Dg) f32 -> (G, N, Dg) bf16.
    G = 3 for the q/k/v projection (group-major output), G = 1 for fc1."""
    N, K = x.shape
    G, _, Dg = w.shape
    tm = _pick_tile(N, _ROW_TILE, 16)
    tn = _pick_tile(Dg, _COL_TILE, 128)
    g2 = gamma.reshape(1, K).astype(jnp.float32)
    beta2 = beta.reshape(1, K).astype(jnp.float32)
    return pl.pallas_call(
        functools.partial(_ln_matmul_kernel, eps=eps, use_gelu=use_gelu),
        out_shape=jax.ShapeDtypeStruct((G, N, Dg), jnp.bfloat16),
        grid=(N // tm, G, Dg // tn),
        in_specs=[
            pl.BlockSpec((tm, K), lambda i, g, j: (i, 0)),
            pl.BlockSpec((1, K), lambda i, g, j: (0, 0)),
            pl.BlockSpec((1, K), lambda i, g, j: (0, 0)),
            pl.BlockSpec((pl.Squeezed(), K, tn), lambda i, g, j: (g, 0, j)),
            pl.BlockSpec((pl.Squeezed(), 1, tn), lambda i, g, j: (g, 0, j)),
        ],
        out_specs=pl.BlockSpec((pl.Squeezed(), tm, tn),
                               lambda i, g, j: (g, i, j)),
        scratch_shapes=[pltpu.VMEM((tm, K), jnp.bfloat16)],
        compiler_params=pltpu.CompilerParams(
            dimension_semantics=("parallel", "arbitrary", "arbitrary"),
            vmem_limit_bytes=_VMEM_LIMIT),
    )(x, g2, beta2, w, b)


def matmul_bias_residual(x, w, b, residual):
    """x @ W + b + residual with K-tiling; bf16 inputs, f32 accum, bf16 out."""
    N, K = x.shape
    Dout = w.shape[1]
    tm = _pick_tile(N, _ROW_TILE, 16)
    tn = _pick_tile(Dout, _COL_TILE, 128)
    tk = _pick_tile(K, _K_TILE, 128)
    bb = b.reshape(1, Dout).astype(jnp.float32)
    return pl.pallas_call(
        _matmul_bias_res_kernel,
        out_shape=jax.ShapeDtypeStruct((N, Dout), jnp.bfloat16),
        grid=(N // tm, Dout // tn, K // tk),
        in_specs=[pl.BlockSpec((tm, tk), lambda i, j, k: (i, k)),
                  pl.BlockSpec((tk, tn), lambda i, j, k: (k, j)),
                  pl.BlockSpec((1, tn), lambda i, j, k: (0, j)),
                  pl.BlockSpec((tm, tn), lambda i, j, k: (i, j))],
        out_specs=pl.BlockSpec((tm, tn), lambda i, j, k: (i, j)),
        scratch_shapes=[pltpu.VMEM((tm, tn), jnp.float32)],
        compiler_params=pltpu.CompilerParams(
            dimension_semantics=("parallel", "parallel", "arbitrary"),
            vmem_limit_bytes=_VMEM_LIMIT),
    )(x, w, bb, residual)


def lm_head_matmul(x, wte_t_bf16):
    """logits = x @ wte^T using a one-time (D, V_pad) bf16 transposed copy."""
    N, D = x.shape
    Vp = wte_t_bf16.shape[1]
    tm = _pick_tile(N, _ROW_TILE, 16)
    tn = _pick_tile(Vp, _COL_TILE, 128)
    return pl.pallas_call(
        _lm_head_kernel,
        out_shape=jax.ShapeDtypeStruct((N, Vp), jnp.float32),
        grid=(N // tm, Vp // tn),
        in_specs=[pl.BlockSpec((tm, D), lambda i, j: (i, 0)),
                  pl.BlockSpec((D, tn), lambda i, j: (0, j))],
        out_specs=pl.BlockSpec((tm, tn), lambda i, j: (i, j)),
        compiler_params=pltpu.CompilerParams(
            dimension_semantics=("parallel", "parallel"),
            vmem_limit_bytes=_VMEM_LIMIT),
    )(x, wte_t_bf16)


def causal_attention(qkv3, n_heads):
    """qkv3: (3, B, S, D) bf16 group-major q/k/v -> (B, S, D) bf16 output."""
    _, B, S, D = qkv3.shape
    Dh = D // n_heads
    scale = 1.0 / math.sqrt(Dh)
    tq = _pick_tile(S, _Q_TILE, 8)
    kernel = functools.partial(_attention_kernel, n_heads=n_heads,
                               scale=scale, q_tile=tq)
    return pl.pallas_call(
        kernel,
        out_shape=jax.ShapeDtypeStruct((B, S, D), jnp.bfloat16),
        grid=(B, S // tq),
        in_specs=[
            pl.BlockSpec((pl.Squeezed(), pl.Squeezed(), tq, D),
                         lambda b, qi: (0, b, qi, 0)),          # q rows
            pl.BlockSpec((pl.Squeezed(), pl.Squeezed(), S, D),
                         lambda b, qi: (1, b, 0, 0)),           # k (full S)
            pl.BlockSpec((pl.Squeezed(), pl.Squeezed(), S, D),
                         lambda b, qi: (2, b, 0, 0)),           # v (full S)
        ],
        out_specs=pl.BlockSpec((pl.Squeezed(), tq, D), lambda b, qi: (b, qi, 0)),
        compiler_params=pltpu.CompilerParams(
            dimension_semantics=("parallel", "parallel"),
            vmem_limit_bytes=_VMEM_LIMIT),
    )(qkv3, qkv3, qkv3)


# ---------------------------------------------------------------------------
# Parameter init (deterministic, synthetic) -- matmul weights stored in bf16
# ---------------------------------------------------------------------------

def init_params(key, dim, n_heads, vocab_size, n_layers, max_seq_len):
    keys = jax.random.split(key, 2 + n_layers)
    std = 0.02
    wte = std * jax.random.normal(keys[0], (vocab_size, dim), jnp.float32)
    # Tied lm_head: one-time transposed bf16 copy, vocab zero-padded to a
    # multiple of 512 so output tiling stays lane-dense (50257 -> 50688 etc.).
    vpad = ((vocab_size + 511) // 512) * 512
    wte_t = jnp.zeros((dim, vpad), jnp.bfloat16)
    wte_t = wte_t.at[:, :vocab_size].set(wte.T.astype(jnp.bfloat16))
    params = {
        "wte": wte,                               # f32 master (embedding gather)
        "wte_t_bf16": wte_t,                      # (D, V_pad) tied lm_head copy
        "wpe": std * jax.random.normal(keys[1], (max_seq_len, dim), jnp.float32),
        "norm_f_g": jnp.ones((dim,), jnp.float32),
        "norm_f_b": jnp.zeros((dim,), jnp.float32),
        "blocks": [],
    }
    for li in range(n_layers):
        k0, k1, k2, k3 = jax.random.split(keys[2 + li], 4)
        blk = {
            "ln1_g": jnp.ones((dim,), jnp.float32),
            "ln1_b": jnp.zeros((dim,), jnp.float32),
            # PyTorch (dim, 3*dim) qkv weight stored group-major (3, dim, dim):
            # group 0 = q columns, 1 = k, 2 = v.
            "w_qkv": (std * jax.random.normal(k0, (3, dim, dim))).astype(jnp.bfloat16),
            "b_qkv": jnp.zeros((3, 1, dim), jnp.float32),
            "w_proj": (std * jax.random.normal(k1, (dim, dim))).astype(jnp.bfloat16),
            "b_proj": jnp.zeros((dim,), jnp.float32),
            "ln2_g": jnp.ones((dim,), jnp.float32),
            "ln2_b": jnp.zeros((dim,), jnp.float32),
            "w_fc1": (std * jax.random.normal(k2, (1, dim, 4 * dim))).astype(jnp.bfloat16),
            "b_fc1": jnp.zeros((1, 1, 4 * dim), jnp.float32),
            "w_fc2": (std * jax.random.normal(k3, (4 * dim, dim))).astype(jnp.bfloat16),
            "b_fc2": jnp.zeros((dim,), jnp.float32),
        }
        params["blocks"].append(blk)
    return params


# ---------------------------------------------------------------------------
# Forward pass (matches the reference Transformer.forward ordering)
# ---------------------------------------------------------------------------

def transformer_forward(params, tokens, *, dim, n_heads, vocab_size,
                        norm_eps=1e-5):
    B, S = tokens.shape

    # Embedding gathers + positional add (plain JAX glue, f32).
    tok_emb = jnp.take(params["wte"], tokens, axis=0)           # (B, S, D)
    pos_emb = params["wpe"][:S]                                 # (S, D)
    x = (tok_emb + pos_emb[None, :, :]).reshape(B * S, dim)     # (N, D) f32

    # Reference applies norm_f right after the embeddings (see module spec).
    x = layer_norm(x, params["norm_f_g"], params["norm_f_b"], eps=norm_eps)

    for blk in params["blocks"]:
        # --- attention sub-block: x + proj(attn(ln1(x))) ---
        residual = x
        qkv3 = ln_matmul(x, blk["ln1_g"], blk["ln1_b"],
                         blk["w_qkv"], blk["b_qkv"], eps=norm_eps)  # (3, N, D)
        attn = causal_attention(qkv3.reshape(3, B, S, dim), n_heads)
        x = matmul_bias_residual(attn.reshape(B * S, dim),
                                 blk["w_proj"], blk["b_proj"], residual)

        # --- MLP sub-block: x + fc2(gelu(fc1(ln2(x)))) ---
        residual = x
        h = ln_matmul(x, blk["ln2_g"], blk["ln2_b"],
                      blk["w_fc1"], blk["b_fc1"], eps=norm_eps, use_gelu=True)
        x = matmul_bias_residual(h.reshape(B * S, 4 * dim),
                                 blk["w_fc2"], blk["b_fc2"], residual)

    # TODO(synk): nn.Dropout(0.1) omitted (inference/eval-mode identity).

    # Tied lm_head: logits = x @ wte^T (pre-transposed, vocab-padded copy).
    logits = lm_head_matmul(x, params["wte_t_bf16"])            # (N, V_pad)
    return logits[:, :vocab_size].reshape(B, S, vocab_size)


# ---------------------------------------------------------------------------
# Main
# ---------------------------------------------------------------------------

if __name__ == "__main__":
    DIM = 32
    N_HEADS = 4
    N_LAYERS = 2
    VOCAB = 64
    MAX_SEQ = 16
    B, S = 2, 8

    key = jax.random.PRNGKey(0)
    pkey, tkey = jax.random.split(key)
    params = init_params(pkey, DIM, N_HEADS, VOCAB, N_LAYERS, MAX_SEQ)
    tokens = jax.random.randint(tkey, (B, S), 0, VOCAB, dtype=jnp.int32)

    logits = transformer_forward(params, tokens, dim=DIM, n_heads=N_HEADS,
                                 vocab_size=VOCAB)
    jax.block_until_ready(logits)
    assert logits.shape == (B, S, VOCAB)
    assert bool(jnp.all(jnp.isfinite(logits)))
    print("KERNEL_OK")
</pallas_src>

<mosaic_0001>
module attributes {stable_mosaic.version = 11 : i64} {
  func.func @_layernorm_kernel(%arg0: i32, %arg1: memref<16x32xf32, #tpu.memory_space<vmem>>, %arg2: memref<1x32xf32, #tpu.memory_space<vmem>>, %arg3: memref<1x32xf32, #tpu.memory_space<vmem>>, %arg4: memref<16x32xbf16, #tpu.memory_space<vmem>>) attributes {dimension_semantics = [#tpu.dimension_semantics<parallel>], iteration_bounds = array<i64: 1>, scalar_prefetch = 0 : i64, scratch_operands = 0 : i64, tpu.core_type = #tpu.core_type<tc>, window_params = [{transform_indices = @transform_0, window_bounds = array<i64: 16, 32>}, {pipeline_mode = #tpu.pipeline_mode<synchronous>, transform_indices = @transform_1, window_bounds = array<i64: 1, 32>}, {pipeline_mode = #tpu.pipeline_mode<synchronous>, transform_indices = @transform_2, window_bounds = array<i64: 1, 32>}, {transform_indices = @transform_3, window_bounds = array<i64: 16, 32>}]} {
    %c0 = arith.constant 0 : index
    %c0_0 = arith.constant 0 : index
    %0 = vector.load %arg1[%c0, %c0_0] : memref<16x32xf32, #tpu.memory_space<vmem>>, vector<16x32xf32>
    %cst = arith.constant dense<0.000000e+00> : vector<16xf32>
    %1 = vector.multi_reduction <add>, %0, %cst [1] : vector<16x32xf32> to vector<16xf32>
    %2 = vector.shape_cast %1 : vector<16xf32> to vector<16x1xf32>
    %cst_1 = arith.constant 3.200000e+01 : f32
    %3 = vector.broadcast %cst_1 : f32 to vector<16x1xf32>
    %4 = arith.divf %2, %3 : vector<16x1xf32>
    %5 = vector.broadcast %4 : vector<16x1xf32> to vector<16x32xf32>
    %6 = arith.subf %0, %5 : vector<16x32xf32>
    %7 = arith.mulf %6, %6 : vector<16x32xf32>
    %cst_2 = arith.constant dense<0.000000e+00> : vector<16xf32>
    %8 = vector.multi_reduction <add>, %7, %cst_2 [1] : vector<16x32xf32> to vector<16xf32>
    %9 = vector.shape_cast %8 : vector<16xf32> to vector<16x1xf32>
    %cst_3 = arith.constant 3.200000e+01 : f32
    %10 = vector.broadcast %cst_3 : f32 to vector<16x1xf32>
    %11 = arith.divf %9, %10 : vector<16x1xf32>
    %12 = vector.broadcast %4 : vector<16x1xf32> to vector<16x32xf32>
    %13 = arith.subf %0, %12 : vector<16x32xf32>
    %cst_4 = arith.constant 9.99999974E-6 : f32
    %14 = vector.broadcast %cst_4 : f32 to vector<16x1xf32>
    %15 = arith.addf %11, %14 : vector<16x1xf32>
    %16 = math.rsqrt %15 : vector<16x1xf32>
    %17 = vector.broadcast %16 : vector<16x1xf32> to vector<16x32xf32>
    %18 = arith.mulf %13, %17 : vector<16x32xf32>
    %c0_5 = arith.constant 0 : index
    %c0_6 = arith.constant 0 : index
    %19 = vector.load %arg2[%c0_5, %c0_6] : memref<1x32xf32, #tpu.memory_space<vmem>>, vector<1x32xf32>
    %20 = vector.broadcast %19 : vector<1x32xf32> to vector<16x32xf32>
    %21 = arith.mulf %18, %20 : vector<16x32xf32>
    %c0_7 = arith.constant 0 : index
    %c0_8 = arith.constant 0 : index
    %22 = vector.load %arg3[%c0_7, %c0_8] : memref<1x32xf32, #tpu.memory_space<vmem>>, vector<1x32xf32>
    %23 = vector.broadcast %22 : vector<1x32xf32> to vector<16x32xf32>
    %24 = arith.addf %21, %23 : vector<16x32xf32>
    %25 = arith.truncf %24 : vector<16x32xf32> to vector<16x32xbf16>
    %c0_9 = arith.constant 0 : index
    %c0_10 = arith.constant 0 : index
    %26 = vector.load %arg4[%c0_9, %c0_10] : memref<16x32xbf16, #tpu.memory_space<vmem>>, vector<16x32xbf16>
    tpu.vector_store %arg4[%c0_9, %c0_10], %25 {strides = array<i32>} : memref<16x32xbf16, #tpu.memory_space<vmem>>, vector<16x32xbf16>,
    return
  }
  func.func @transform_0(%arg0: i32) -> (i32, i32) {
    %c0_i32 = arith.constant 0 : i32
    %c0_i32_0 = arith.constant 0 : i32
    return %arg0, %c0_i32 : i32, i32
  }
  func.func @transform_1(%arg0: i32) -> (i32, i32) {
    %c0_i32 = arith.constant 0 : i32
    %c0_i32_0 = arith.constant 0 : i32
    %c0_i32_1 = arith.constant 0 : i32
    return %c0_i32, %c0_i32_0 : i32, i32
  }
  func.func @transform_2(%arg0: i32) -> (i32, i32) {
    %c0_i32 = arith.constant 0 : i32
    %c0_i32_0 = arith.constant 0 : i32
    %c0_i32_1 = arith.constant 0 : i32
    return %c0_i32, %c0_i32_0 : i32, i32
  }
  func.func @transform_3(%arg0: i32) -> (i32, i32) {
    %c0_i32 = arith.constant 0 : i32
    %c0_i32_0 = arith.constant 0 : i32
    return %arg0, %c0_i32 : i32, i32
  }
}

</mosaic_0001>

<bundles_post_ra>
// kernel: tpu_custom_call.1
= control target key start
LH: loop header
LB: loop body
LE: loop exit
PB: predicated region body
PF: predicated region fallthrough
CT: control target
= control target key end

     0   :  { %8 = vsyncpa [#allocation3], 0  ;;  %s274_s0 = inlined_call_operand.hbm [shape: f32[16,32], index: 0, kind: input, shape index: {}]   ;;  %s275_s1 = inlined_call_operand.hbm [shape: f32[1,32], index: 1, kind: input, shape index: {}]   ;;  %s276_s2 = inlined_call_operand.vmem [shape: f32[1,32], index: 2, kind: input, shape index: {}]   ;;  %s277_s3 = inlined_call_operand.hbm [shape: bf16[16,32], index: 3, kind: output, shape index: {}]  }
   0x1   :  { %9 = vsyncpa [#allocation6], 0 }
   0x2   :  { %10 = vsyncpa [#allocation4], 0  ;;  %s15_s14 = sshll.u32 %s274_s0, 4  ;;  %s230_s15 = smov [#allocation2]   ;;  %s16_s14 = int_to_ptr.hbm [resolvable:$true] %s15_s14 }
   0x3   :  { %s17_s16 = sshll.u32 %s230_s15, 4  ;;  %s29_s19 = sshll.u32 %s275_s1, 4  ;;  %s18_s16 = int_to_ptr.vmem [resolvable:$true] %s17_s16  ;;  %s30_s19 = int_to_ptr.hbm [resolvable:$true] %s29_s19 }
   0x4   :  { %s231_s20 = smov 128   ;;  %s232_s21 = smov 8  }
   0x5   :  { %23 = dma.hbm_to_vmem [thread:$0]  %s16_s14, 256, %s18_s16, [#allocation3], %s231_s20, %s231_s20, %s232_s21  }
   0x6   :  { %s233_s22 = smov [#allocation5]  }
   0x7   :  { %s31_s23 = sshll.u32 %s233_s22, 4  ;;  %s32_s23 = int_to_ptr.vmem [resolvable:$true] %s31_s23 }
   0x8   :  { %34 = dma.hbm_to_vmem [thread:$0]  %s30_s19, 16, %s32_s23, [#allocation6]  }
   0x9   :  { %224 = dma.done.wait [#allocation3], 256  }
   0xa   :  { %225 = vsyncadd [#allocation3], 4294967040 }
   0xb   :  { %226 = dma.done.wait [#allocation6], 16  }
   0xc   :  { %227 = vsyncadd [#allocation6], 4294967280  ;;  %vm47_vm0 = vcmask 261120   ;;  %v45_v0 = vld [vmem:[#allocation2] sm:$0xff]  ;;  %v46_v2 = vld [vmem:[#allocation2 + $0x8] sm:$0xff]  ;;  %v234_v4 = vmov 32.0  }
   0xd   :  { %v48_v1 = vsel %vm47_vm0, %v45_v0, 0.0  ;;  %v51_v3 = vsel %vm47_vm0, %v46_v2, 0.0  ;;  %146 = vrcp.f32 %v234_v4  ;;  %v144_v35 = vld [vmem:[#allocation5] ss:$0 sm:$0xff]  ;;  %v145_v38 = vld [vmem:[%s276_s2] ss:$0 sm:$0xff] }
   0xe   :  { %49 = vadd.xlane.f32.xlu0 %v48_v1  ;;  %vm113_vm7 = vcmask 257024   ;;  %s235_s24 = smov [#allocation7]   ;;  %s122_s2 = sshll.u32 %s277_s3, 4  ;;  %s123_s2 = int_to_ptr.hbm [resolvable:$true] %s122_s2 }
   0xf   :  { %s120_s25 = sshll.u32 %s235_s24, 4  ;;  %s236_s28 = smov 64   ;;  %s121_s25 = int_to_ptr.vmem [resolvable:$true] %s120_s25 }
  0x10   :  { %s237_s29 = smov 4  }
  0x13   :  { %v147_v5 = vpop.eup %146 }
  0x14   :  { %v55_v6 = vmul.f32 32.0, %v147_v5  ;;  %vm59_vm1 = vweird.f32 %v147_v5 }
  0x16   :  { %52 = vadd.xlane.f32.xlu0 %v51_v3  ;;  %v56_v7 = vsub.f32 1.0, %v55_v6 }
  0x18   :  { %v57_v8 = vmul.f32 %v147_v5, %v56_v7 }
  0x1a   :  { %v58_v9 = vadd.f32 %v147_v5, %v57_v8 }
  0x1c   :  { %v60_v10 = vsel %vm59_vm1, %v147_v5, %v58_v9 }
  0x81   :  { %v50_v11 = vpop.xlane.xlu0 %49 }
  0x82   :  { %v61_v12 = vmul.f32 %v60_v10, %v50_v11 }
  0x84   :  { %v63_v13 = vsub.f32 %v45_v0, %v61_v12 }
  0x86   :  { %v65_v14 = vmul.f32 %v63_v13, %v63_v13 }
  0x88   :  { %v67_v15 = vsel %vm47_vm0, %v65_v14, 0.0 }
  0x89   :  { %68 = vadd.xlane.f32.xlu1 %v67_v15  ;;  %v53_v16 = vpop.xlane.xlu0 %52 }
  0x8a   :  { %v62_v17 = vmul.f32 %v60_v10, %v53_v16 }
  0x8c   :  { %v64_v18 = vsub.f32 %v46_v2, %v62_v17 }
  0x8e   :  { %v66_v19 = vmul.f32 %v64_v18, %v64_v18 }
  0x90   :  { %v70_v20 = vsel %vm47_vm0, %v66_v19, 0.0 }
  0x91   :  { %71 = vadd.xlane.f32.xlu1 %v70_v20 }
  0xfc   :  { %v69_v21 = vpop.xlane.xlu1 %68 }
  0xfd   :  { %v73_v22 = vmul.f32 %v69_v21, %v60_v10 }
  0xff   :  { %v75_v23 = vadd.f32 1e-05, %v73_v22 }
 0x101   :  { %148 = vrsqrt.f32 %v75_v23  ;;  %vm83_vm3 = vweird.f32 %v75_v23 }
 0x104   :  { %v72_v24 = vpop.xlane.xlu1 %71 }
 0x105   :  { %v74_v25 = vmul.f32 %v72_v24, %v60_v10 }
 0x107   :  { %v149_v26 = vpop.eup %148  ;;  %v76_v27 = vadd.f32 1e-05, %v74_v25 }
 0x108   :  { %v78_v28 = vmul.f32 %v149_v26, %v75_v23  ;;  %vm84_vm2 = vweird.f32 %v149_v26 }
 0x109   :  { %150 = vrsqrt.f32 %v76_v27  ;;  %vm85_vm4 = vmor %vm83_vm3, %vm84_vm2  ;;  %vm93_vm6 = vweird.f32 %v76_v27 }
 0x10a   :  { %v79_v29 = vmul.f32 %v149_v26, %v78_v28 }
 0x10c   :  { %v80_v30 = vmul.f32 0.5, %v79_v29 }
 0x10e   :  { %v81_v31 = vsub.f32 1.5, %v80_v30 }
 0x10f   :  { %v151_v32 = vpop.eup %150 }
 0x110   :  { %v82_v33 = vmul.f32 %v149_v26, %v81_v31  ;;  %v88_v34 = vmul.f32 %v151_v32, %v76_v27  ;;  %vm94_vm5 = vweird.f32 %v151_v32 }
 0x111   :  { %vm95_vm8 = vmor %vm93_vm6, %vm94_vm5 }
 0x112   :  { %v86_v36 = vsel %vm85_vm4, %v149_v26, %v82_v33  ;;  %v89_v37 = vmul.f32 %v151_v32, %v88_v34 }
 0x113   :  { %v97_v39 = vmul.f32 %v86_v36, %v63_v13 }
 0x114   :  { %v90_v40 = vmul.f32 0.5, %v89_v37 }
 0x115   :  { %v103_v41 = vmul.f32 %v144_v35, %v97_v39 }
 0x116   :  { %v91_v42 = vsub.f32 1.5, %v90_v40 }
 0x117   :  { %v109_v43 = vadd.f32 %v145_v38, %v103_v41 }
 0x118   :  { %v92_v44 = vmul.f32 %v151_v32, %v91_v42 }
 0x119   :  { %v111_v45 = vpack.c.bf16 %v109_v43, %v109_v43 }
 0x11a   :  { %v96_v46 = vsel %vm95_vm8, %v151_v32, %v92_v44 }
 0x11b   :  { %v98_v47 = vmul.f32 %v96_v46, %v64_v18  ;;  %114 = vst.msk [vmem:[#allocation7] sm:$0xf] %vm113_vm7, %v111_v45 }
 0x11d   :  { %v104_v48 = vmul.f32 %v144_v35, %v98_v47 }
 0x11f   :  { %v110_v49 = vadd.f32 %v145_v38, %v104_v48 }
 0x121   :  { %v112_v50 = vpack.c.bf16 %v110_v49, %v110_v49 }
 0x123   :  { %115 = vst.msk [vmem:[#allocation7 + $0x4] sm:$0xf] %vm113_vm7, %v112_v50 }
 0x124   :  { %128 = dma.vmem_to_hbm [thread:$0]  %s121_s25, 128, %s123_s2, [#allocation4], %s236_s28, %s236_s28, %s237_s29  }
 0x125   :  { %228 = dma.done.wait [#allocation4], 128  }
 0x126   :  { %229 = vsyncadd [#allocation4], 4294967168 }
 0x127   :  { %133 = vsyncpa [#allocation3], 1 }
 0x128   :  { %134 = vsyncpa [#allocation6], 1 }
 0x129   :  { %135 = vsyncpa [#allocation4], 1 }

</bundles_post_ra>
